<compile_context>
chip_gen: v5e
topology: v5e:2x2
jax: 0.10.0
libtpu: 0.0.40
codegen_flags: <defaults>
</compile_context>

<pallas_src>
import jax
import jax.numpy as jnp
import numpy as np
from jax.experimental import pallas as pl
from jax.experimental.pallas import tpu as pltpu


def decoder_kernel(
    # inputs
    tok_ref,      # (N,)   int32  SMEM   token ids
    len_ref,      # (N, 1) int32  VMEM   context lengths
    embed_ref,    # (V, H) f32           embedding table
    w1_ref,       # (2H+C, 4H) f32       fused LSTM1 weights  [w_x ; w_ctx ; w_h]
    b1_ref,       # (1, 4H) f32          LSTM1 bias (b_ih + b_hh)
    w2_ref,       # (H+K, 4K) f32        fused LSTM2 weights  [w_x ; w_h]
    b2_ref,       # (1, 4K) f32
    wo_ref,       # (K+C, V) f32         fused output projection [w_h ; w_ctx]
    bo_ref,       # (1, V) f32
    h1_ref, c1_ref,   # (N, H) f32       LSTM1 state
    h2_ref, c2_ref,   # (N, K) f32       LSTM2 state
    pctx_ref,     # (N, C) f32           previous attention context
    ctx_ref,      # (N, T, C) f32        encoder outputs
    # outputs
    logits_ref,   # (N, V)
    nh1_ref, nc1_ref,   # (N, H)
    nh2_ref, nc2_ref,   # (N, K)
    attn_ref,     # (N, T)
):
    N, H = h1_ref.shape
    K = h2_ref.shape[1]
    T = ctx_ref.shape[1]

    # ---- Embedding gather: SMEM scalar ids -> dynamic row slices of the table ----
    # (N is tiny & static -> unrolled; no one-hot matmul, no (N,V) vreg pressure.)
    emb = jnp.concatenate(
        [embed_ref[pl.ds(tok_ref[n], 1), :] for n in range(N)], axis=0)      # (N, H)

    # ---- LSTMCell 1: single fused gate matmul on [emb ; prev_ctx ; h1] ----
    x1 = jnp.concatenate([emb, pctx_ref[...], h1_ref[...]], axis=1)          # (N, 2H+C)
    g1 = jnp.dot(x1, w1_ref[...], preferred_element_type=jnp.float32) + b1_ref[...]
    i1 = jax.nn.sigmoid(g1[:, 0:H])
    f1 = jax.nn.sigmoid(g1[:, H:2 * H])
    gg1 = jnp.tanh(g1[:, 2 * H:3 * H])
    o1 = jax.nn.sigmoid(g1[:, 3 * H:4 * H])
    c1n = f1 * c1_ref[...] + i1 * gg1
    h1n = o1 * jnp.tanh(c1n)                                                 # (N, H)

    # ---- LSTMCell 2: fused gate matmul on [h1n ; h2] ----
    x2 = jnp.concatenate([h1n, h2_ref[...]], axis=1)                         # (N, H+K)
    g2 = jnp.dot(x2, w2_ref[...], preferred_element_type=jnp.float32) + b2_ref[...]
    i2 = jax.nn.sigmoid(g2[:, 0:K])
    f2 = jax.nn.sigmoid(g2[:, K:2 * K])
    gg2 = jnp.tanh(g2[:, 2 * K:3 * K])
    o2 = jax.nn.sigmoid(g2[:, 3 * K:4 * K])
    c2n = f2 * c2_ref[...] + i2 * gg2
    h2n = o2 * jnp.tanh(c2n)                                                 # (N, K)

    # ---- Masked dot-product attention over the encoder context ----
    ctx = ctx_ref[...]                                                       # (N, T, C)
    # energy[n, t] = <ctx[n, t, :], h2n[n, :]>  (broadcast-mul + lane reduce)
    energy = jnp.sum(ctx * h2n[:, None, :], axis=2)                          # (N, T)
    t_iota = jax.lax.broadcasted_iota(jnp.int32, (N, T), 1)
    energy = jnp.where(t_iota < len_ref[...], energy, -1e30)
    energy = energy - jnp.max(energy, axis=1, keepdims=True)
    p = jnp.exp(energy)
    inv_denom = pl.reciprocal(jnp.sum(p, axis=1, keepdims=True), approx=True)
    attn = p * inv_denom                                                     # (N, T)

    # Context vector: weighted sum over T (VPU broadcast-mul + sublane reduce);
    # avoids lowering a tiny per-batch (1,T)x(T,C) matmul per row on the MXU.
    x_att = jnp.sum(attn[:, :, None] * ctx, axis=1)                          # (N, C)

    # ---- Output projection: single fused matmul on [h2n ; x_att] ----
    xo = jnp.concatenate([h2n, x_att], axis=1)                               # (N, K+C)
    logits = jnp.dot(xo, wo_ref[...], preferred_element_type=jnp.float32) + bo_ref[...]

    logits_ref[...] = logits
    nh1_ref[...] = h1n
    nc1_ref[...] = c1n
    nh2_ref[...] = h2n
    nc2_ref[...] = c2n
    attn_ref[...] = attn


@jax.jit
def decoder_forward(tok, ctx_len, context, prev_ctx, state, params):
    N = tok.shape[0]
    T, C = context.shape[1], context.shape[2]
    V, H = params["embed"].shape
    K = state["h2"].shape[1]

    # Fuse the split weights so every stage is one matmul inside the kernel.
    # Layout matches the activation concatenation order in the kernel.
    w1 = jnp.concatenate([params["w1_x"], params["w1_c"], params["w1_h"]], axis=0)  # (2H+C, 4H)
    w2 = jnp.concatenate([params["w2_x"], params["w2_h"]], axis=0)                  # (H+K, 4K)
    wo = jnp.concatenate([params["wo_h"], params["wo_c"]], axis=0)                  # (K+C, V)

    # Clamp token ids: the in-kernel gather has no OOB check.
    tok_s = jnp.clip(tok.astype(jnp.int32), 0, V - 1)                               # (N,)

    inputs = (
        tok_s,                                             # 0  (SMEM)
        ctx_len.reshape(N, 1).astype(jnp.int32),           # 1
        params["embed"],                                   # 2
        w1, params["b1"],                                  # 3, 4
        w2, params["b2"],                                  # 5, 6
        wo, params["bo"],                                  # 7, 8
        state["h1"], state["c1"],                          # 9, 10
        state["h2"], state["c2"],                          # 11, 12
        prev_ctx,                                          # 13
        context,                                           # 14
    )
    out_shape = (
        jax.ShapeDtypeStruct((N, V), jnp.float32),   # 0 logits
        jax.ShapeDtypeStruct((N, H), jnp.float32),   # 1 new h1
        jax.ShapeDtypeStruct((N, H), jnp.float32),   # 2 new c1
        jax.ShapeDtypeStruct((N, K), jnp.float32),   # 3 new h2
        jax.ShapeDtypeStruct((N, K), jnp.float32),   # 4 new c2
        jax.ShapeDtypeStruct((N, T), jnp.float32),   # 5 attention weights
    )
    smem = pl.BlockSpec(memory_space=pltpu.MemorySpace.SMEM)
    vmem = pl.BlockSpec(memory_space=pltpu.MemorySpace.VMEM)
    return pl.pallas_call(
        decoder_kernel,
        out_shape=out_shape,
        in_specs=[smem] + [vmem] * (len(inputs) - 1),
        out_specs=tuple([vmem] * len(out_shape)),
        # Alias recurrent state inputs to the new-state outputs (in-place update
        # for the autoregressive decode loop).
        input_output_aliases={9: 1, 10: 2, 11: 3, 12: 4},
    )(*inputs)


def reference_forward(tok, ctx_len, context, prev_ctx, state, params):
    """Pure-JAX reference (split weights, exact softmax) for verification."""
    H = state["h1"].shape[1]
    K = state["h2"].shape[1]
    emb = params["embed"][tok]
    g1 = (emb @ params["w1_x"] + prev_ctx @ params["w1_c"]
          + state["h1"] @ params["w1_h"] + params["b1"])
    i1, f1, gg1, o1 = (jax.nn.sigmoid(g1[:, :H]), jax.nn.sigmoid(g1[:, H:2 * H]),
                       jnp.tanh(g1[:, 2 * H:3 * H]), jax.nn.sigmoid(g1[:, 3 * H:]))
    c1n = f1 * state["c1"] + i1 * gg1
    h1n = o1 * jnp.tanh(c1n)
    g2 = h1n @ params["w2_x"] + state["h2"] @ params["w2_h"] + params["b2"]
    i2, f2, gg2, o2 = (jax.nn.sigmoid(g2[:, :K]), jax.nn.sigmoid(g2[:, K:2 * K]),
                       jnp.tanh(g2[:, 2 * K:3 * K]), jax.nn.sigmoid(g2[:, 3 * K:]))
    c2n = f2 * state["c2"] + i2 * gg2
    h2n = o2 * jnp.tanh(c2n)
    energy = jnp.einsum("ntc,nc->nt", context, h2n)
    T = context.shape[1]
    mask = jnp.arange(T)[None, :] < ctx_len[:, None]
    energy = jnp.where(mask, energy, -1e30)
    attn = jax.nn.softmax(energy, axis=1)
    x_att = jnp.einsum("nt,ntc->nc", attn, context)
    logits = h2n @ params["wo_h"] + x_att @ params["wo_c"] + params["bo"]
    return logits, h1n, c1n, h2n, c2n, attn


if __name__ == "__main__":
    # Small shapes consistent with the module: key_size == context_size for dot attention.
    N, T, V, H, K, C = 2, 8, 16, 32, 32, 32

    key = jax.random.PRNGKey(0)
    keys = jax.random.split(key, 20)

    def init(k, shape, scale=0.1):
        return jax.random.normal(k, shape, dtype=jnp.float32) * scale

    params = {
        "embed": init(keys[0], (V, H)),
        "w1_x": init(keys[1], (H, 4 * H)),
        "w1_c": init(keys[2], (C, 4 * H)),
        "w1_h": init(keys[3], (H, 4 * H)),
        "b1":   init(keys[4], (1, 4 * H)),
        "w2_x": init(keys[5], (H, 4 * K)),
        "w2_h": init(keys[6], (K, 4 * K)),
        "b2":   init(keys[7], (1, 4 * K)),
        "wo_h": init(keys[8], (K, V)),
        "wo_c": init(keys[9], (C, V)),
        "bo":   init(keys[10], (1, V)),
    }
    state = {
        "h1": init(keys[11], (N, H)),
        "c1": init(keys[12], (N, H)),
        "h2": init(keys[13], (N, K)),
        "c2": init(keys[14], (N, K)),
    }
    tok = jax.random.randint(keys[15], (N,), 0, V, dtype=jnp.int32)
    context = init(keys[16], (N, T, C), scale=0.5)
    prev_ctx = init(keys[17], (N, C), scale=0.5)
    ctx_len = jnp.array([T, T - 3], dtype=jnp.int32)

    outs = decoder_forward(tok, ctx_len, context, prev_ctx, state, params)
    outs = jax.block_until_ready(outs)

    refs = reference_forward(tok, ctx_len, context, prev_ctx, state, params)

    # States are exact modulo matmul-fusion reassociation; logits/attn additionally
    # include the approximate (EUP) softmax reciprocal -> slightly looser tolerance.
    tols = [(5e-3, 5e-3),   # logits
            (2e-3, 2e-3),   # h1
            (2e-3, 2e-3),   # c1
            (2e-3, 2e-3),   # h2
            (2e-3, 2e-3),   # c2
            (5e-3, 5e-3)]   # attention
    for got, want, (atol, rtol) in zip(outs, refs, tols):
        assert got.shape == want.shape and got.dtype == want.dtype
        np.testing.assert_allclose(np.asarray(got), np.asarray(want),
                                   atol=atol, rtol=rtol)

    print("KERNEL_OK")
</pallas_src>

<mosaic_0001>
module attributes {stable_mosaic.version = 11 : i64} {
  func.func @decoder_kernel(%arg0: memref<2xi32, #tpu.memory_space<smem>>, %arg1: memref<2x1xi32, #tpu.memory_space<vmem>>, %arg2: memref<16x32xf32, #tpu.memory_space<vmem>>, %arg3: memref<96x128xf32, #tpu.memory_space<vmem>>, %arg4: memref<1x128xf32, #tpu.memory_space<vmem>>, %arg5: memref<64x128xf32, #tpu.memory_space<vmem>>, %arg6: memref<1x128xf32, #tpu.memory_space<vmem>>, %arg7: memref<64x16xf32, #tpu.memory_space<vmem>>, %arg8: memref<1x16xf32, #tpu.memory_space<vmem>>, %arg9: memref<2x32xf32, #tpu.memory_space<vmem>>, %arg10: memref<2x32xf32, #tpu.memory_space<vmem>>, %arg11: memref<2x32xf32, #tpu.memory_space<vmem>>, %arg12: memref<2x32xf32, #tpu.memory_space<vmem>>, %arg13: memref<2x32xf32, #tpu.memory_space<vmem>>, %arg14: memref<2x8x32xf32, #tpu.memory_space<vmem>>, %arg15: memref<2x16xf32, #tpu.memory_space<vmem>>, %arg16: memref<2x32xf32, #tpu.memory_space<vmem>>, %arg17: memref<2x32xf32, #tpu.memory_space<vmem>>, %arg18: memref<2x32xf32, #tpu.memory_space<vmem>>, %arg19: memref<2x32xf32, #tpu.memory_space<vmem>>, %arg20: memref<2x8xf32, #tpu.memory_space<vmem>>) attributes {dimension_semantics = [], scalar_prefetch = 0 : i64, scratch_operands = 0 : i64, tpu.core_type = #tpu.core_type<tc>} {
    %c0 = arith.constant 0 : index
    %0 = memref.load %arg0[%c0] : memref<2xi32, #tpu.memory_space<smem>>
    %1 = arith.index_cast %0 : i32 to index
    %c0_0 = arith.constant 0 : index
    %2 = vector.load %arg2[%1, %c0_0] : memref<16x32xf32, #tpu.memory_space<vmem>>, vector<1x32xf32>
    %c1 = arith.constant 1 : index
    %3 = memref.load %arg0[%c1] : memref<2xi32, #tpu.memory_space<smem>>
    %4 = arith.index_cast %3 : i32 to index
    %c0_1 = arith.constant 0 : index
    %5 = vector.load %arg2[%4, %c0_1] : memref<16x32xf32, #tpu.memory_space<vmem>>, vector<1x32xf32>
    %6 = tpu.concatenate %2, %5 in 0 : vector<1x32xf32>, vector<1x32xf32> -> vector<2x32xf32>
    %c0_2 = arith.constant 0 : index
    %c0_3 = arith.constant 0 : index
    %7 = vector.load %arg13[%c0_2, %c0_3] : memref<2x32xf32, #tpu.memory_space<vmem>>, vector<2x32xf32>
    %c0_4 = arith.constant 0 : index
    %c0_5 = arith.constant 0 : index
    %8 = vector.load %arg9[%c0_4, %c0_5] : memref<2x32xf32, #tpu.memory_space<vmem>>, vector<2x32xf32>
    %9 = tpu.concatenate %6, %7, %8 in 1 : vector<2x32xf32>, vector<2x32xf32>, vector<2x32xf32> -> vector<2x96xf32>
    %c0_6 = arith.constant 0 : index
    %c0_7 = arith.constant 0 : index
    %10 = vector.load %arg3[%c0_6, %c0_7] : memref<96x128xf32, #tpu.memory_space<vmem>>, vector<96x128xf32>
    %cst = arith.constant dense<0.000000e+00> : vector<2x128xf32>
    %11 = tpu.matmul %9, %10, %cst {dimension_numbers = #tpu.dot_dimension_numbers<[1], [0], [0], [1], [0, 0, 1, 1], [], []>} : vector<2x96xf32>, vector<96x128xf32>, vector<2x128xf32> -> vector<2x128xf32>
    %c0_8 = arith.constant 0 : index
    %c0_9 = arith.constant 0 : index
    %12 = vector.load %arg4[%c0_8, %c0_9] : memref<1x128xf32, #tpu.memory_space<vmem>>, vector<1x128xf32>
    %13 = vector.broadcast %12 : vector<1x128xf32> to vector<2x128xf32>
    %14 = arith.addf %11, %13 : vector<2x128xf32>
    %15 = vector.extract_strided_slice %14 {offsets = [0, 0], sizes = [2, 32], strides = [1, 1]} : vector<2x128xf32> to vector<2x32xf32>
    %16 = arith.negf %15 : vector<2x32xf32>
    %17 = math.exp %16 : vector<2x32xf32>
    %cst_10 = arith.constant 1.000000e+00 : f32
    %18 = vector.broadcast %cst_10 : f32 to vector<2x32xf32>
    %19 = arith.addf %18, %17 : vector<2x32xf32>
    %20 = arith.divf %18, %19 : vector<2x32xf32>
    %21 = vector.extract_strided_slice %14 {offsets = [0, 32], sizes = [2, 32], strides = [1, 1]} : vector<2x128xf32> to vector<2x32xf32>
    %22 = arith.negf %21 : vector<2x32xf32>
    %23 = math.exp %22 : vector<2x32xf32>
    %cst_11 = arith.constant 1.000000e+00 : f32
    %24 = vector.broadcast %cst_11 : f32 to vector<2x32xf32>
    %25 = arith.addf %24, %23 : vector<2x32xf32>
    %26 = arith.divf %24, %25 : vector<2x32xf32>
    %27 = vector.extract_strided_slice %14 {offsets = [0, 64], sizes = [2, 32], strides = [1, 1]} : vector<2x128xf32> to vector<2x32xf32>
    %28 = math.tanh %27 : vector<2x32xf32>
    %29 = vector.extract_strided_slice %14 {offsets = [0, 96], sizes = [2, 32], strides = [1, 1]} : vector<2x128xf32> to vector<2x32xf32>
    %30 = arith.negf %29 : vector<2x32xf32>
    %31 = math.exp %30 : vector<2x32xf32>
    %cst_12 = arith.constant 1.000000e+00 : f32
    %32 = vector.broadcast %cst_12 : f32 to vector<2x32xf32>
    %33 = arith.addf %32, %31 : vector<2x32xf32>
    %34 = arith.divf %32, %33 : vector<2x32xf32>
    %c0_13 = arith.constant 0 : index
    %c0_14 = arith.constant 0 : index
    %35 = vector.load %arg10[%c0_13, %c0_14] : memref<2x32xf32, #tpu.memory_space<vmem>>, vector<2x32xf32>
    %36 = arith.mulf %26, %35 : vector<2x32xf32>
    %37 = arith.mulf %20, %28 : vector<2x32xf32>
    %38 = arith.addf %36, %37 : vector<2x32xf32>
    %39 = math.tanh %38 : vector<2x32xf32>
    %40 = arith.mulf %34, %39 : vector<2x32xf32>
    %c0_15 = arith.constant 0 : index
    %c0_16 = arith.constant 0 : index
    %41 = vector.load %arg11[%c0_15, %c0_16] : memref<2x32xf32, #tpu.memory_space<vmem>>, vector<2x32xf32>
    %42 = tpu.concatenate %40, %41 in 1 : vector<2x32xf32>, vector<2x32xf32> -> vector<2x64xf32>
    %c0_17 = arith.constant 0 : index
    %c0_18 = arith.constant 0 : index
    %43 = vector.load %arg5[%c0_17, %c0_18] : memref<64x128xf32, #tpu.memory_space<vmem>>, vector<64x128xf32>
    %cst_19 = arith.constant dense<0.000000e+00> : vector<2x128xf32>
    %44 = tpu.matmul %42, %43, %cst_19 {dimension_numbers = #tpu.dot_dimension_numbers<[1], [0], [0], [1], [0, 0, 1, 1], [], []>} : vector<2x64xf32>, vector<64x128xf32>, vector<2x128xf32> -> vector<2x128xf32>
    %c0_20 = arith.constant 0 : index
    %c0_21 = arith.constant 0 : index
    %45 = vector.load %arg6[%c0_20, %c0_21] : memref<1x128xf32, #tpu.memory_space<vmem>>, vector<1x128xf32>
    %46 = vector.broadcast %45 : vector<1x128xf32> to vector<2x128xf32>
    %47 = arith.addf %44, %46 : vector<2x128xf32>
    %48 = vector.extract_strided_slice %47 {offsets = [0, 0], sizes = [2, 32], strides = [1, 1]} : vector<2x128xf32> to vector<2x32xf32>
    %49 = arith.negf %48 : vector<2x32xf32>
    %50 = math.exp %49 : vector<2x32xf32>
    %cst_22 = arith.constant 1.000000e+00 : f32
    %51 = vector.broadcast %cst_22 : f32 to vector<2x32xf32>
    %52 = arith.addf %51, %50 : vector<2x32xf32>
    %53 = arith.divf %51, %52 : vector<2x32xf32>
    %54 = vector.extract_strided_slice %47 {offsets = [0, 32], sizes = [2, 32], strides = [1, 1]} : vector<2x128xf32> to vector<2x32xf32>
    %55 = arith.negf %54 : vector<2x32xf32>
    %56 = math.exp %55 : vector<2x32xf32>
    %cst_23 = arith.constant 1.000000e+00 : f32
    %57 = vector.broadcast %cst_23 : f32 to vector<2x32xf32>
    %58 = arith.addf %57, %56 : vector<2x32xf32>
    %59 = arith.divf %57, %58 : vector<2x32xf32>
    %60 = vector.extract_strided_slice %47 {offsets = [0, 64], sizes = [2, 32], strides = [1, 1]} : vector<2x128xf32> to vector<2x32xf32>
    %61 = math.tanh %60 : vector<2x32xf32>
    %62 = vector.extract_strided_slice %47 {offsets = [0, 96], sizes = [2, 32], strides = [1, 1]} : vector<2x128xf32> to vector<2x32xf32>
    %63 = arith.negf %62 : vector<2x32xf32>
    %64 = math.exp %63 : vector<2x32xf32>
    %cst_24 = arith.constant 1.000000e+00 : f32
    %65 = vector.broadcast %cst_24 : f32 to vector<2x32xf32>
    %66 = arith.addf %65, %64 : vector<2x32xf32>
    %67 = arith.divf %65, %66 : vector<2x32xf32>
    %c0_25 = arith.constant 0 : index
    %c0_26 = arith.constant 0 : index
    %68 = vector.load %arg12[%c0_25, %c0_26] : memref<2x32xf32, #tpu.memory_space<vmem>>, vector<2x32xf32>
    %69 = arith.mulf %59, %68 : vector<2x32xf32>
    %70 = arith.mulf %53, %61 : vector<2x32xf32>
    %71 = arith.addf %69, %70 : vector<2x32xf32>
    %72 = math.tanh %71 : vector<2x32xf32>
    %73 = arith.mulf %67, %72 : vector<2x32xf32>
    %c0_27 = arith.constant 0 : index
    %c0_28 = arith.constant 0 : index
    %c0_29 = arith.constant 0 : index
    %74 = vector.load %arg14[%c0_27, %c0_28, %c0_29] : memref<2x8x32xf32, #tpu.memory_space<vmem>>, vector<2x8x32xf32>
    %75 = vector.shape_cast %73 : vector<2x32xf32> to vector<2x1x32xf32>
    %76 = vector.broadcast %75 : vector<2x1x32xf32> to vector<2x8x32xf32>
    %77 = arith.mulf %74, %76 : vector<2x8x32xf32>
    %cst_30 = arith.constant dense<0.000000e+00> : vector<2x8xf32>
    %78 = vector.multi_reduction <add>, %77, %cst_30 [2] : vector<2x8x32xf32> to vector<2x8xf32>
    %79 = tpu.iota {dimensions = array<i32: 1>} : vector<2x8xi32>
    %c0_31 = arith.constant 0 : index
    %c0_32 = arith.constant 0 : index
    %80 = vector.load %arg1[%c0_31, %c0_32] : memref<2x1xi32, #tpu.memory_space<vmem>>, vector<2x1xi32>
    %81 = vector.broadcast %80 : vector<2x1xi32> to vector<2x8xi32>
    %82 = arith.cmpi slt, %79, %81 : vector<2x8xi32>
    %cst_33 = arith.constant -1.000000e+30 : f32
    %83 = vector.broadcast %cst_33 : f32 to vector<2x8xf32>
    %84 = arith.select %82, %78, %83 : vector<2x8xi1>, vector<2x8xf32>
    %cst_34 = arith.constant dense<0xFF800000> : vector<2xf32>
    %85 = vector.multi_reduction <maximumf>, %84, %cst_34 [1] : vector<2x8xf32> to vector<2xf32>
    %86 = vector.shape_cast %85 : vector<2xf32> to vector<2x1xf32>
    %87 = vector.broadcast %86 : vector<2x1xf32> to vector<2x8xf32>
    %88 = arith.subf %84, %87 : vector<2x8xf32>
    %89 = math.exp %88 : vector<2x8xf32>
    %cst_35 = arith.constant dense<0.000000e+00> : vector<2xf32>
    %90 = vector.multi_reduction <add>, %89, %cst_35 [1] : vector<2x8xf32> to vector<2xf32>
    %91 = vector.shape_cast %90 : vector<2xf32> to vector<2x1xf32>
    %92 = tpu.reciprocal %91 {approx = true} : vector<2x1xf32> -> vector<2x1xf32>
    %93 = vector.broadcast %92 : vector<2x1xf32> to vector<2x8xf32>
    %94 = arith.mulf %89, %93 : vector<2x8xf32>
    %95 = vector.shape_cast %94 : vector<2x8xf32> to vector<2x8x1xf32>
    %96 = vector.broadcast %95 : vector<2x8x1xf32> to vector<2x8x32xf32>
    %97 = arith.mulf %96, %74 : vector<2x8x32xf32>
    %cst_36 = arith.constant dense<0.000000e+00> : vector<2x32xf32>
    %98 = vector.multi_reduction <add>, %97, %cst_36 [1] : vector<2x8x32xf32> to vector<2x32xf32>
    %99 = tpu.concatenate %73, %98 in 1 : vector<2x32xf32>, vector<2x32xf32> -> vector<2x64xf32>
    %c0_37 = arith.constant 0 : index
    %c0_38 = arith.constant 0 : index
    %100 = vector.load %arg7[%c0_37, %c0_38] : memref<64x16xf32, #tpu.memory_space<vmem>>, vector<64x16xf32>
    %cst_39 = arith.constant dense<0.000000e+00> : vector<2x16xf32>
    %101 = tpu.matmul %99, %100, %cst_39 {dimension_numbers = #tpu.dot_dimension_numbers<[1], [0], [0], [1], [0, 0, 1, 1], [], []>} : vector<2x64xf32>, vector<64x16xf32>, vector<2x16xf32> -> vector<2x16xf32>
    %c0_40 = arith.constant 0 : index
    %c0_41 = arith.constant 0 : index
    %102 = vector.load %arg8[%c0_40, %c0_41] : memref<1x16xf32, #tpu.memory_space<vmem>>, vector<1x16xf32>
    %103 = vector.broadcast %102 : vector<1x16xf32> to vector<2x16xf32>
    %104 = arith.addf %101, %103 : vector<2x16xf32>
    %c0_42 = arith.constant 0 : index
    %c0_43 = arith.constant 0 : index
    %105 = vector.load %arg15[%c0_42, %c0_43] : memref<2x16xf32, #tpu.memory_space<vmem>>, vector<2x16xf32>
    tpu.vector_store %arg15[%c0_42, %c0_43], %104 {strides = array<i32>} : memref<2x16xf32, #tpu.memory_space<vmem>>, vector<2x16xf32>,
    %c0_44 = arith.constant 0 : index
    %c0_45 = arith.constant 0 : index
    %106 = vector.load %arg16[%c0_44, %c0_45] : memref<2x32xf32, #tpu.memory_space<vmem>>, vector<2x32xf32>
    tpu.vector_store %arg16[%c0_44, %c0_45], %40 {strides = array<i32>} : memref<2x32xf32, #tpu.memory_space<vmem>>, vector<2x32xf32>,
    %c0_46 = arith.constant 0 : index
    %c0_47 = arith.constant 0 : index
    %107 = vector.load %arg17[%c0_46, %c0_47] : memref<2x32xf32, #tpu.memory_space<vmem>>, vector<2x32xf32>
    tpu.vector_store %arg17[%c0_46, %c0_47], %38 {strides = array<i32>} : memref<2x32xf32, #tpu.memory_space<vmem>>, vector<2x32xf32>,
    %c0_48 = arith.constant 0 : index
    %c0_49 = arith.constant 0 : index
    %108 = vector.load %arg18[%c0_48, %c0_49] : memref<2x32xf32, #tpu.memory_space<vmem>>, vector<2x32xf32>
    tpu.vector_store %arg18[%c0_48, %c0_49], %73 {strides = array<i32>} : memref<2x32xf32, #tpu.memory_space<vmem>>, vector<2x32xf32>,
    %c0_50 = arith.constant 0 : index
    %c0_51 = arith.constant 0 : index
    %109 = vector.load %arg19[%c0_50, %c0_51] : memref<2x32xf32, #tpu.memory_space<vmem>>, vector<2x32xf32>
    tpu.vector_store %arg19[%c0_50, %c0_51], %71 {strides = array<i32>} : memref<2x32xf32, #tpu.memory_space<vmem>>, vector<2x32xf32>,
    %c0_52 = arith.constant 0 : index
    %c0_53 = arith.constant 0 : index
    %110 = vector.load %arg20[%c0_52, %c0_53] : memref<2x8xf32, #tpu.memory_space<vmem>>, vector<2x8xf32>
    tpu.vector_store %arg20[%c0_52, %c0_53], %94 {strides = array<i32>} : memref<2x8xf32, #tpu.memory_space<vmem>>, vector<2x8xf32>,
    return
  }
}

</mosaic_0001>

<bundles_post_ra>
// kernel: decoder_forward.1
= control target key start
LH: loop header
LB: loop body
LE: loop exit
PB: predicated region body
PF: predicated region fallthrough
CT: control target
= control target key end

     0   :  { %s1184_s0 = inlined_call_operand.vmem [shape: s32[2], index: 0, kind: input, shape index: {}]   ;;  %s1185_s1 = inlined_call_operand.vmem [shape: s32[2,1], index: 1, kind: input, shape index: {}]   ;;  %s1186_s2 = inlined_call_operand.vmem [shape: f32[16,32], index: 2, kind: input, shape index: {}]   ;;  %s1187_s3 = inlined_call_operand.vmem [shape: f32[96,128], index: 3, kind: input, shape index: {}]   ;;  %s1188_s4 = inlined_call_operand.vmem [shape: f32[1,128], index: 4, kind: input, shape index: {}]   ;;  %s1189_s5 = inlined_call_operand.vmem [shape: f32[64,128], index: 5, kind: input, shape index: {}]   ;;  %s1190_s6 = inlined_call_operand.vmem [shape: f32[1,128], index: 6, kind: input, shape index: {}]   ;;  %s1191_s7 = inlined_call_operand.vmem [shape: f32[64,16], index: 7, kind: input, shape index: {}]   ;;  %s1192_s8 = inlined_call_operand.vmem [shape: f32[1,16], index: 8, kind: input, shape index: {}]   ;;  %s1193_s9 = inlined_call_operand.hbm [shape: f32[2,32], index: 9, kind: input, shape index: {}, may-alias: {9,16}]   ;;  %s1194_s10 = inlined_call_operand.hbm [shape: f32[2,32], index: 10, kind: input, shape index: {}, may-alias: {10,17}]   ;;  %s1195_s11 = inlined_call_operand.hbm [shape: f32[2,32], index: 11, kind: input, shape index: {}, may-alias: {11,18}]   ;;  %s1196_s12 = inlined_call_operand.hbm [shape: f32[2,32], index: 12, kind: input, shape index: {}, may-alias: {12,19}]   ;;  %s1197_s13 = inlined_call_operand.vmem [shape: f32[2,32], index: 13, kind: input, shape index: {}]   ;;  %s1198_s14 = inlined_call_operand.vmem [shape: f32[2,8,32], index: 14, kind: input, shape index: {}]   ;;  %s1199_s15 = inlined_call_operand.hbm [shape: f32[2,16], index: 15, kind: output, shape index: {0}]   ;;  %s1200_s16 = inlined_call_operand.hbm [shape: f32[2,32], index: 16, kind: output, shape index: {1}, may-alias: {9,16}]   ;;  %s1201_s17 = inlined_call_operand.hbm [shape: f32[2,32], index: 17, kind: output, shape index: {2}, may-alias: {10,17}]   ;;  %s1202_s18 = inlined_call_operand.hbm [shape: f32[2,32], index: 18, kind: output, shape index: {3}, may-alias: {11,18}]   ;;  %s1203_s19 = inlined_call_operand.hbm [shape: f32[2,32], index: 19, kind: output, shape index: {4}, may-alias: {12,19}]   ;;  %s1204_s20 = inlined_call_operand.hbm [shape: f32[2,8], index: 20, kind: output, shape index: {5}]  }
   0x1   :  { %1207 = sst [smem:[#allocation29_spill]] %s1184_s0 }
   0x2   :  { %1208 = sst [smem:[#allocation30_spill]] %s1185_s1 }
   0x3   :  { %1209 = sst [smem:[#allocation31_spill]] %s1186_s2 }
   0x4   :  { %1210 = sst [smem:[#allocation32_spill]] %s1187_s3 }
   0x5   :  { %1211 = sst [smem:[#allocation33_spill]] %s1188_s4 }
   0x6   :  { %26 = vsyncpa [#allocation5], 0 }
   0x7   :  { %27 = vsyncpa [#allocation3], 0 }
   0x8   :  { %28 = vsyncpa [#allocation8], 0 }
   0x9   :  { %29 = vsyncpa [#allocation11], 0 }
   0xa   :  { %30 = vsyncpa [#allocation4], 0 }
   0xb   :  { %31 = vsyncpa [#allocation14], 0 }
   0xc   :  { %32 = vsyncpa [#allocation17], 0  ;;  %s75_s23 = sshll.u32 %s1194_s10, 4  ;;  %s76_s23 = int_to_ptr.hbm [resolvable:$true] %s75_s23 }
   0xd   :  { %33 = vsyncpa [#allocation20], 0  ;;  %s875_s24 = smov [#allocation7]   ;;  %s1212_s26 = sld [smem:[#allocation29_spill]] }
   0xe   :  { %s77_s2 = sshll.u32 %s875_s24, 4  ;;  %s876_s28 = smov [#allocation2]   ;;  %s78_s2 = int_to_ptr.vmem [resolvable:$true] %s77_s2 }
   0xf   :  { %80 = dma.hbm_to_vmem [thread:$0]  %s76_s23, 32, %s78_s2, [#allocation8]  }
  0x10   :  { %s64_s30 = sshll.u32 %s1193_s9, 4  ;;  %s877_s0 = smov [#allocation6]   ;;  %s65_s30 = int_to_ptr.hbm [resolvable:$true] %s64_s30 }
  0x11   :  { %s66_s10 = sshll.u32 %s877_s0, 4  ;;  %s86_s22 = sshll.u32 %s1195_s11, 4  ;;  %s67_s10 = int_to_ptr.vmem [resolvable:$true] %s66_s10  ;;  %s87_s22 = int_to_ptr.hbm [resolvable:$true] %s86_s22 }
  0x12   :  { %69 = dma.hbm_to_vmem [thread:$0]  %s65_s30, 32, %s67_s10, [#allocation3]  }
  0x13   :  { %s39_s27 = sshll.u32 %s1212_s26, 4  ;;  %s878_s24 = smov [#allocation9]   ;;  %s40_s27 = int_to_ptr.vmem [resolvable:$true] %s39_s27 }
  0x14   :  { %42 = dma.vmem_to_smem %s40_s27, 16, %s876_s28, [#allocation5]  }
  0x15   :  { %s88_s25 = sshll.u32 %s878_s24, 4  ;;  %s97_s3 = sshll.u32 %s1196_s12, 4  ;;  %s89_s25 = int_to_ptr.vmem [resolvable:$true] %s88_s25  ;;  %s98_s3 = int_to_ptr.hbm [resolvable:$true] %s97_s3 }
  0x16   :  { %91 = dma.hbm_to_vmem [thread:$0]  %s87_s22, 32, %s89_s25, [#allocation8]  }
  0x17   :  { %s879_s9 = smov [#allocation10]  }
  0x18   :  { %s99_s26 = sshll.u32 %s879_s9, 4  ;;  %s100_s26 = int_to_ptr.vmem [resolvable:$true] %s99_s26 }
  0x19   :  { %102 = dma.hbm_to_vmem [thread:$0]  %s98_s3, 32, %s100_s26, [#allocation11]  }
  0x1a   :  { %859 = dma.done.wait [#allocation5], 16  }
  0x1b   :  { %860 = vsyncadd [#allocation5], 4294967280 }
  0x1c   :  { %861 = dma.done.wait [#allocation3], 32  }
  0x1d   :  { %862 = vsyncadd [#allocation3], 4294967264 }
  0x1e   :  { %863 = dma.done.wait [#allocation8], 64  }
  0x1f   :  { %864 = vsyncadd [#allocation8], 4294967232 }
  0x20   :  { %865 = dma.done.wait [#allocation11], 32  }
  0x21   :  { %866 = vsyncadd [#allocation11], 4294967264 }
  0x22   :  { %127 = sfence }
  0x23   :  { %v139_v0 = vld [vmem:[%s1197_s13] sm:$0x3]  ;;  %s880_s12 = smov 32   ;;  %s1213_s29 = sld [smem:[#allocation32_spill]]  ;;  %vm137_vm0 = vcmask 1040384   ;;  %vm149_vm1 = vcmask 261120  }
  0x24   :  { %142 = vrot.lane.b32.xlu0 %v139_v0, %s880_s12  ;;  %v140_v5 = vld [vmem:[#allocation6] sm:$0x3]  ;;  %s881_s25 = smov 64   ;;  %s560_s22 = sld [smem:[#allocation2 + $0x1]]  ;;  %vm151_vm2 = vcmask 523264   ;;  %vm169_vm3 = vcmask 785408  }
  0x25   :  { %s128_s13 = sld [smem:[#allocation2]]  ;;  %v213_v26 = vld [vmem:[#allocation7] sm:$0x3]  ;;  %v235_v47 = vld [vmem:[#allocation9] sm:$0x3]  ;;  %v252_v48 = vld [vmem:[%s1189_s5 + $0x38] sm:$0xff] }
  0x26   :  { %s1214_s2 = sld [smem:[#allocation31_spill]]  ;;  %v251_v49 = vld [vmem:[%s1189_s5 + $0x30] sm:$0xff]  ;;  %268 = vmatpush.msra.mxu1 %v252_v48  ;;  %v250_v50 = vld [vmem:[%s1189_s5 + $0x28] sm:$0xff]  ;;  %v249_v51 = vld [vmem:[%s1189_s5 + $0x20] sm:$0xff]  ;;  %vm446_vm8 = vcmask 254976   ;;  %vm353_vm13 = vcmask 1041409  }
  0x27   :  { %s1215_s28 = sld [smem:[#allocation33_spill]]  ;;  %v248_v52 = vld [vmem:[%s1189_s5 + $0x18] sm:$0xff]  ;;  %v247_v53 = vld [vmem:[%s1189_s5 + $0x10] sm:$0xff]  ;;  %v246_v54 = vld [vmem:[%s1189_s5 + $0x8] sm:$0xff]  ;;  %vm357_vm15 = vcmask 58368   ;;  %s478_s10 = sshll.u32 %s1200_s16, 4  ;;  %s479_s10 = int_to_ptr.hbm [resolvable:$true] %s478_s10 }
  0x28   :  { %269 = vmatpush.msra.mxu1 %v251_v49  ;;  %v245_v57 = vld [vmem:[%s1189_s5] sm:$0xff]  ;;  %s1216_s4 = sld [smem:[#allocation30_spill]]  ;;  %s500_s1 = sshll.u32 %s1202_s18, 4  ;;  %s501_s1 = int_to_ptr.hbm [resolvable:$true] %s500_s1 }
  0x29   :  { %v164_v1 = vld [vmem:[%s1213_s29 + $0x58] sm:$0xff]  ;;  %v163_v2 = vld [vmem:[%s1213_s29 + $0x50] sm:$0xff]  ;;  %v162_v3 = vld [vmem:[%s1213_s29 + $0x48] sm:$0xff]  ;;  %s489_s16 = sshll.u32 %s1201_s17, 4  ;;  %s511_s9 = sshll.u32 %s1203_s19, 4  ;;  %s490_s16 = int_to_ptr.hbm [resolvable:$true] %s489_s16  ;;  %s512_s9 = int_to_ptr.hbm [resolvable:$true] %s511_s9 }
  0x2a   :  { %177 = vmatpush.msra.mxu0 %v164_v1  ;;  %v161_v4 = vld [vmem:[%s1213_s29 + $0x40] sm:$0xff]  ;;  %v160_v6 = vld [vmem:[%s1213_s29 + $0x38] sm:$0xff]  ;;  %v159_v7 = vld [vmem:[%s1213_s29 + $0x30] sm:$0xff]  ;;  %270 = vmatpush.msra.mxu1 %v250_v50  ;;  %s887_s26 = smov [#allocation18]   ;;  %s888_s18 = smov [#allocation19]  }
  0x2b   :  { %v158_v8 = vld [vmem:[%s1213_s29 + $0x28] sm:$0xff]  ;;  %v157_v9 = vld [vmem:[%s1213_s29 + $0x20] sm:$0xff]  ;;  %v156_v10 = vld [vmem:[%s1213_s29 + $0x18] sm:$0xff]  ;;  %s522_s5 = sshll.u32 %s1204_s20, 4  ;;  %s523_s5 = int_to_ptr.hbm [resolvable:$true] %s522_s5 }
  0x2c   :  { %178 = vmatpush.msra.mxu0 %v163_v2  ;;  %146 = vrot.lane.b32.xlu0 %v140_v5, %s881_s25  ;;  %v155_v11 = vld [vmem:[%s1213_s29 + $0x10] sm:$0xff]  ;;  %v154_v12 = vld [vmem:[%s1213_s29 + $0x8] sm:$0xff]  ;;  %v153_v13 = vld [vmem:[%s1213_s29] sm:$0xff]  ;;  %s132_s3 = scalar_lea.vmem %s1214_s2, %s560_s22  ;;  %s129_s11 = scalar_lea.vmem %s1214_s2, %s128_s13 }
  0x2d   :  { %v133_v14 = vld [vmem:[%s132_s3] sm:$0x1]  ;;  %271 = vmatpush.msra.mxu1 %v249_v51  ;;  %v300_v58 = vld [vmem:[#allocation10] sm:$0x3]  ;;  %s886_s22 = smov [#allocation15]   ;;  %s520_s29 = sshll.u32 %s888_s18, 4  ;;  %s521_s29 = int_to_ptr.vmem [resolvable:$true] %s520_s29 }
  0x2e   :  { %179 = vmatpush.msra.mxu0 %v162_v3  ;;  %v135_v16 = vrot.slane %v133_v14, 7  ;;  %v130_v17 = vld [vmem:[%s129_s11] sm:$0x1]  ;;  %s487_s13 = sshll.u32 %s886_s22, 4  ;;  %s509_s11 = sshll.u32 %s887_s26, 4  ;;  %s488_s13 = int_to_ptr.vmem [resolvable:$true] %s487_s13  ;;  %s510_s11 = int_to_ptr.vmem [resolvable:$true] %s509_s11 }
  0x2f   :  { %v584_v22 = vld [vmem:[%s1215_s28] ss:$0 sm:$0xff]  ;;  %272 = vmatpush.msra.mxu1 %v248_v52 }
  0x30   :  { %180 = vmatpush.msra.mxu0 %v161_v4  ;;  %v138_v18 = vsel %vm137_vm0, %v130_v17, %v135_v16  ;;  %v585_v62 = vld [vmem:[%s1190_s6] ss:$0 sm:$0xff]  ;;  %vm444_vm0 = vcmask 123904  }
  0x31   :  { %273 = vmatpush.msra.mxu1 %v247_v53 }
  0x32   :  { %181 = vmatpush.msra.mxu0 %v160_v6 }
  0x33   :  { %274 = vmatpush.msra.mxu1 %v246_v54 }
  0x34   :  { %182 = vmatpush.msra.mxu0 %v159_v7 }
  0x35   :  { %275 = vmatpush.msra.mxu1 %v245_v57 }
  0x36   :  { %183 = vmatpush.msra.mxu0 %v158_v8 }
  0x38   :  { %184 = vmatpush.msra.mxu0 %v157_v9 }
  0x3a   :  { %185 = vmatpush.msra.mxu0 %v156_v10 }
  0x3c   :  { %186 = vmatpush.msra.mxu0 %v155_v11 }
  0x3e   :  { %187 = vmatpush.msra.mxu0 %v154_v12 }
  0x40   :  { %188 = vmatpush.msra.mxu0 %v153_v13 }
  0x96   :  { %v143_v15 = vpop.permute.xlu0 %142 }
  0x97   :  { %v150_v19 = vsel %vm149_vm1, %v138_v18, %v143_v15 }
  0x9e   :  { %v147_v20 = vpop.permute.xlu0 %146 }
  0x9f   :  { %v152_v21 = vsel %vm151_vm2, %v150_v19, %v147_v20 }
  0xa0   :  { %561 = vmatmul.msk.f32.vlgmr.msra.gmra.mxu0 %vm169_vm3, %v152_v21 }
 0x11d   :  { %v190_v23 = vpop.f32.mrf.mxu0 }
 0x11e   :  { %v191_v24 = vadd.f32 %v584_v22, %v190_v23 }
 0x120   :  { %587 = vtanh.f32 %v191_v24  ;;  %v562_v27 = vmul.f32 -1.442695, %v191_v24 }
 0x122   :  { %589 = vpow2.f32 %v562_v27  ;;  %v344_v27 = vld [vmem:[%s1216_s4] sm:$0x3]  ;;  %s884_s4 = smov [#allocation13]  }
 0x123   :  { %s476_s30 = sshll.u32 %s884_s4, 4  ;;  %s889_s4 = smov [#allocation12]   ;;  %s477_s30 = int_to_ptr.vmem [resolvable:$true] %s476_s30 }
 0x124   :  { %s465_s19 = sshll.u32 %s889_s4, 4  ;;  %s466_s19 = int_to_ptr.vmem [resolvable:$true] %s465_s19 }
 0x126   :  { %v588_v25 = vpop.eup %587 }
 0x127   :  { %220 = vrot.lane.b32.xlu1 %v588_v25, %s881_s25 }
 0x128   :  { %v590_v28 = vpop.eup %589 }
 0x129   :  { %v196_v29 = vadd.f32 1.0, %v590_v28  ;;  %v882_v28 = vmov 0  }
 0x12a   :  { %581 = vset.pattern.permute.xlu1 %v882_v28 }
 0x12b   :  { %591 = vrcp.f32 %v196_v29  ;;  %v208_v35 = vand.u32 2147483648, %v196_v29  ;;  %vm202_vm5 = vweird.f32 %v196_v29  ;;  %v206_v36 = vand.u32 2147483647, %v196_v29 }
 0x12d   :  { %v209_v38 = vor.u32 1.1754944e-38, %v208_v35  ;;  %vm207_vm7 = vcmp.eq.f32.partialorder %v206_v36, 8.507059e+37 }
 0x12f   :  { %215 = vrot.lane.b32.xlu1 %v213_v26, %s880_s12 }
 0x131   :  { %v592_v30 = vpop.eup %591 }
 0x132   :  { %v198_v31 = vmul.f32 %v592_v30, %v196_v29  ;;  %vm203_vm4 = vweird.f32 %v592_v30  ;;  %v322_v29 = vld [vmem:[%s1198_s14] sm:$0xff] }
 0x133   :  { %vm204_vm6 = vmor %vm202_vm5, %vm203_vm4 }
 0x134   :  { %v199_v32 = vsub.f32 1.0, %v198_v31  ;;  %v1116_v31 = vld [vmem:[%s1198_s14 + $0x8] sm:$0xff]  ;;  %s883_s14 = smov 96  }
 0x136   :  { %v200_v33 = vmul.f32 %v592_v30, %v199_v32 }
 0x137   :  { %241 = vrot.lane.b32.xlu1 %v235_v47, %s880_s12 }
 0x138   :  { %v201_v34 = vadd.f32 %v592_v30, %v200_v33 }
 0x13a   :  { %v205_v37 = vsel %vm204_vm6, %v592_v30, %v201_v34 }
 0x13b   :  { %v210_v40 = vsel %vm207_vm7, %v209_v38, %v205_v37  ;;  %v342_v37 = vlaneseq }
 0x13d   :  { %v343_v38 = vand.u32 127, %v342_v37 }
 0x199   :  { %v221_v39 = vpop.permute.xlu1 %220 }
 0x19a   :  { %v223_v41 = vmul.f32 %v221_v39, %v210_v40 }
 0x19c   :  { %225 = vrot.lane.b32.xlu2 %v223_v41, %s880_s12 }
 0x1a1   :  { %v216_v42 = vpop.permute.xlu1 %215 }
 0x1a2   :  { %v218_v43 = vmul.f32 %v216_v42, %v210_v40 }
 0x1a9   :  { %v242_v59 = vpop.permute.xlu1 %241 }
 0x1f6   :  { %v226_v44 = vpop.permute.xlu2 %225 }
 0x1f7   :  { %v1065_v45 = vadd.f32 %v226_v44, %v218_v43 }
 0x1f9   :  { %593 = vtanh.f32 %v1065_v45 }
 0x1ff   :  { %v594_v46 = vpop.eup %593 }
 0x200   :  { %231 = vrot.lane.b32.xlu2 %v594_v46, %s881_s25 }
 0x25a   :  { %v232_v55 = vpop.permute.xlu2 %231 }
 0x25b   :  { %v234_v56 = vmul.f32 %v232_v55, %v210_v40  ;;  %v371_v55 = vshrl.u32 %v342_v37, 7 }
 0x25d   :  { %237 = vrot.lane.b32.xlu0 %v234_v56, %s880_s12  ;;  %582 = vset.pattern.permute.xlu2 %v371_v55 }
 0x25e   :  { %583 = vset.pattern.permute.xlu0 %v371_v55 }
 0x265   :  { %302 = vrot.lane.b32.xlu0 %v300_v58, %s880_s12 }
 0x2cf   :  { %v238_v60 = vpop.permute.xlu0 %237 }
 0x2d0   :  { %v244_v61 = vsel %vm149_vm1, %v238_v60, %v242_v59  ;;  %447 = vst.msk [vmem:[#allocation13] sm:$0x3] %vm446_vm8, %v238_v60 }
 0x2d1   :  { %563 = vmatmul.msk.f32.vlgmr.msra.gmra.mxu1 %vm151_vm2, %v244_v61  ;;  %481 = dma.vmem_to_hbm [thread:$0]  %s477_s30, 32, %s479_s10, [#allocation14]  }
 0x2d7   :  { %v303_v17 = vpop.permute.xlu0 %302 }
 0x34e   :  { %v277_v63 = vpop.f32.mrf.mxu1 }
 0x34f   :  { %v278_v0 = vadd.f32 %v585_v62, %v277_v63 }
 0x351   :  { %595 = vtanh.f32 %v278_v0  ;;  %v564_v2 = vmul.f32 -1.442695, %v278_v0  ;;  %v416_v0 = vld [vmem:[%s1191_s7 + $0x38] sm:$0xff] }
 0x352   :  { %432 = vmatpush.msra.mxu2 %v416_v0 }
 0x353   :  { %597 = vpow2.f32 %v564_v2 }
 0x357   :  { %v596_v1 = vpop.eup %595 }
 0x358   :  { %307 = vrot.lane.b32.xlu2 %v596_v1, %s881_s25  ;;  %v415_v1 = vld [vmem:[%s1191_s7 + $0x30] sm:$0xff] }
 0x359   :  { %v598_v3 = vpop.eup %597  ;;  %433 = vmatpush.msra.mxu2 %v415_v1 }
 0x35a   :  { %v283_v4 = vadd.f32 1.0, %v598_v3  ;;  %v414_v3 = vld [vmem:[%s1191_s7 + $0x28] sm:$0xff] }
 0x35b   :  { %434 = vmatpush.msra.mxu2 %v414_v3 }
 0x35c   :  { %599 = vrcp.f32 %v283_v4  ;;  %v295_v10 = vand.u32 2147483648, %v283_v4  ;;  %vm289_vm10 = vweird.f32 %v283_v4  ;;  %v293_v11 = vand.u32 2147483647, %v283_v4 }
 0x35e   :  { %v296_v13 = vor.u32 1.1754944e-38, %v295_v10  ;;  %vm294_vm12 = vcmp.eq.f32.partialorder %v293_v11, 8.507059e+37 }
 0x362   :  { %v600_v5 = vpop.eup %599 }
 0x363   :  { %v285_v6 = vmul.f32 %v600_v5, %v283_v4  ;;  %vm290_vm9 = vweird.f32 %v600_v5  ;;  %v413_v4 = vld [vmem:[%s1191_s7 + $0x20] sm:$0xff] }
 0x364   :  { %vm291_vm11 = vmor %vm289_vm10, %vm290_vm9  ;;  %435 = vmatpush.msra.mxu2 %v413_v4 }
 0x365   :  { %v286_v7 = vsub.f32 1.0, %v285_v6  ;;  %v412_v6 = vld [vmem:[%s1191_s7 + $0x18] sm:$0xff] }
 0x366   :  { %436 = vmatpush.msra.mxu2 %v412_v6 }
 0x367   :  { %v287_v8 = vmul.f32 %v600_v5, %v286_v7 }
 0x369   :  { %v288_v9 = vadd.f32 %v600_v5, %v287_v8 }
 0x36b   :  { %v292_v12 = vsel %vm291_vm11, %v600_v5, %v288_v9  ;;  %v411_v9 = vld [vmem:[%s1191_s7 + $0x10] sm:$0xff] }
 0x36c   :  { %v297_v14 = vsel %vm294_vm12, %v296_v13, %v292_v12  ;;  %v410_v12 = vld [vmem:[%s1191_s7 + $0x8] sm:$0xff]  ;;  %437 = vmatpush.msra.mxu2 %v411_v9 }
 0x36d   :  { %v305_v18 = vmul.f32 %v303_v17, %v297_v14 }
 0x36e   :  { %438 = vmatpush.msra.mxu2 %v410_v12 }
 0x3b2   :  { %v308_v15 = vpop.permute.xlu2 %307 }
 0x3b3   :  { %v310_v16 = vmul.f32 %v308_v15, %v297_v14 }
 0x3b5   :  { %312 = vrot.lane.b32.xlu1 %v310_v16, %s880_s12 }
 0x427   :  { %v313_v19 = vpop.permute.xlu1 %312 }
 0x428   :  { %v315_v20 = vadd.f32 %v313_v19, %v305_v18 }
 0x42a   :  { %601 = vtanh.f32 %v315_v20 }
 0x430   :  { %v602_v21 = vpop.eup %601 }
 0x431   :  { %318 = vrot.lane.b32.xlu2 %v602_v21, %s881_s25  ;;  %s467_s25 = sshll.u32 %s1199_s15, 4  ;;  %s468_s25 = int_to_ptr.hbm [resolvable:$true] %s467_s25 }
 0x48b   :  { %v319_v22 = vpop.permute.xlu2 %318 }
 0x48c   :  { %v321_v23 = vmul.f32 %v319_v22, %v297_v14 }
 0x48e   :  { %v326_v24 = vperm.slane %v321_v23, 0  ;;  %v325_v25 = vrot.slane %v321_v23, 1 }
 0x490   :  { %328 = vrot.lane.b32.xlu0 %v326_v24, %s880_s12  ;;  %v327_v26 = vperm.slane %v325_v25, 0 }
 0x492   :  { %330 = vrot.lane.b32.xlu1 %v327_v26, %s880_s12 }
 0x49a   :  { %346 = vperm.xlu1 %581, %v344_v27  }
 0x502   :  { %v329_v30 = vpop.permute.xlu0 %328 }
 0x503   :  { %v334_v32 = vmul.f32 %v329_v30, %v322_v29 }
 0x504   :  { %v331_v33 = vpop.permute.xlu1 %330 }
 0x505   :  { %v335_v34 = vmul.f32 %v331_v33, %v1116_v31  ;;  %v336_v35 = vsel %vm149_vm1, %v334_v32, 0.0 }
 0x506   :  { %337 = vadd.xlane.f32.xlu2 %v336_v35 }
 0x507   :  { %v339_v36 = vsel %vm149_vm1, %v335_v34, 0.0 }
 0x508   :  { %340 = vadd.xlane.f32.xlu0 %v339_v36 }
 0x50c   :  { %v347_v40 = vpop.permute.xlu1 %346 }
 0x50d   :  { %vm348_vm14 = vcmp.lt.s32.totalorder %v343_v38, %v347_v40 }
 0x579   :  { %v338_v39 = vpop.xlane.xlu2 %337 }
 0x57a   :  { %v351_v42 = vperm.slane %v338_v39, %v343_v38 }
 0x57b   :  { %v341_v41 = vpop.xlane.xlu0 %340 }
 0x57c   :  { %v352_v43 = vperm.slane %v341_v41, %v343_v38 }
 0x57e   :  { %v354_v44 = vsel %vm353_vm13, %v352_v43, %v351_v42 }
 0x57f   :  { %v356_v46 = vsel %vm348_vm14, %v354_v44, -1e+30 }
 0x580   :  { %v358_v47 = vsel %vm357_vm15, %v356_v46, -inf }
 0x581   :  { %359 = vmax.xlane.f32.xlu1 %v358_v47 }
 0x59a   :  { %399 = vrot.lane.b32.xlu1 %v321_v23, %s880_s12  ;;  %v409_v23 = vld [vmem:[%s1191_s7] sm:$0xff] }
 0x59b   :  { %439 = vmatpush.msra.mxu2 %v409_v23 }
 0x5a2   :  { %455 = vrot.lane.b32.xlu1 %v315_v20, %s883_s14 }
 0x5f4   :  { %v360_v48 = vpop.xlane.xlu1 %359 }
 0x5f5   :  { %v361_v49 = vsub.f32 %v356_v46, %v360_v48 }
 0x5f7   :  { %v362_v50 = vmul.f32 1.442695, %v361_v49 }
 0x5f9   :  { %603 = vpow2.f32 %v362_v50 }
 0x5ff   :  { %v604_v51 = vpop.eup %603 }
 0x600   :  { %v364_v52 = vsel %vm357_vm15, %v604_v51, 0.0 }
 0x601   :  { %365 = vadd.xlane.f32.xlu2 %v364_v52 }
 0x60c   :  { %v400_v53 = vpop.permute.xlu1 %399 }
 0x60d   :  { %453 = vst.msk [vmem:[#allocation16] sm:$0x3] %vm446_vm8, %v400_v53 }
 0x614   :  { %v456_v54 = vpop.permute.xlu1 %455 }
 0x615   :  { %458 = vst.msk [vmem:[#allocation18] sm:$0x3] %vm446_vm8, %v456_v54 }
 0x674   :  { %v366_v56 = vpop.xlane.xlu2 %365 }
 0x675   :  { %605 = vrcp.f32 %v366_v56 }
 0x67b   :  { %v606_v57 = vpop.eup %605 }
 0x67c   :  { %v368_v58 = vmul.f32 %v606_v57, %v604_v51 }
 0x67e   :  { %459 = vst.msk [vmem:[#allocation19] sm:$0x3] %vm357_vm15, %v368_v58  ;;  %v376_v59 = vperm.slane %v368_v58, 1  ;;  %v369_v60 = vperm.slane %v368_v58, 0 }
 0x67f   :  { %525 = dma.vmem_to_hbm [thread:$0]  %s521_s29, 32, %s523_s5, [#allocation20]  }
 0x680   :  { %381 = vperm.xlu0 %583, %v376_v59   ;;  %374 = vperm.xlu2 %582, %v369_v60  }
 0x6da   :  { %v375_v61 = vpop.permute.xlu2 %374 }
 0x6db   :  { %v383_v62 = vmul.f32 %v375_v61, %v322_v29 }
 0x6dd   :  { %v385_v63 = vsel %vm149_vm1, %v383_v62, 0.0 }
 0x6de   :  { %v386_v2 = vrot.slane %v385_v63, 4 }
 0x6e0   :  { %v387_v5 = vadd.f32 %v386_v2, %v385_v63 }
 0x6e2   :  { %v388_v10 = vrot.slane %v387_v5, 2 }
 0x6e4   :  { %v389_v14 = vadd.f32 %v388_v10, %v387_v5 }
 0x6e6   :  { %v390_v17 = vrot.slane %v389_v14, 1 }
 0x6e8   :  { %v391_v20 = vadd.f32 %v390_v17, %v389_v14 }
 0x6f2   :  { %v382_v7 = vpop.permute.xlu0 %381 }
 0x6f3   :  { %v384_v8 = vmul.f32 %v382_v7, %v1116_v31 }
 0x6f5   :  { %v392_v11 = vsel %vm149_vm1, %v384_v8, 0.0 }
 0x6f6   :  { %v393_v13 = vrot.slane %v392_v11, 4 }
 0x6f8   :  { %v394_v15 = vadd.f32 %v393_v13, %v392_v11 }
 0x6fa   :  { %v395_v16 = vrot.slane %v394_v15, 2 }
 0x6fc   :  { %v396_v18 = vadd.f32 %v395_v16, %v394_v15 }
 0x6fe   :  { %v397_v19 = vrot.slane %v396_v18, 1 }
 0x700   :  { %v398_v21 = vadd.f32 %v397_v19, %v396_v18 }
 0x702   :  { %v404_v22 = vsel %vm353_vm13, %v398_v21, %v391_v20 }
 0x703   :  { %405 = vrot.lane.b32.xlu2 %v404_v22, %s880_s12  ;;  %s885_s12 = smov [#allocation16]  }
 0x704   :  { %s498_s7 = sshll.u32 %s885_s12, 4  ;;  %s499_s7 = int_to_ptr.vmem [resolvable:$true] %s498_s7 }
 0x705   :  { %503 = dma.vmem_to_hbm [thread:$0]  %s499_s7, 32, %s501_s1, [#allocation17]  }
 0x706   :  { %514 = dma.vmem_to_hbm [thread:$0]  %s510_s11, 32, %s512_s9, [#allocation17]  }
 0x70b   :  { %449 = vrot.lane.b32.xlu2 %v1065_v45, %s883_s14  ;;  %v586_v45 = vld [vmem:[%s1192_s8] ss:$0 sm:$0xff] }
 0x75d   :  { %v406_v24 = vpop.permute.xlu2 %405 }
 0x75e   :  { %v408_v25 = vsel %vm149_vm1, %v400_v53, %v406_v24 }
 0x75f   :  { %565 = vmatmul.msk.f32.vlgmr.msra.gmra.mxu2 %vm151_vm2, %v408_v25 }
 0x765   :  { %v450_v26 = vpop.permute.xlu2 %449 }
 0x766   :  { %452 = vst.msk [vmem:[#allocation15] sm:$0x3] %vm446_vm8, %v450_v26 }
 0x767   :  { %492 = dma.vmem_to_hbm [thread:$0]  %s488_s13, 32, %s490_s16, [#allocation14]  }
 0x7e2   :  { %v441_v27 = vpop.f32.mrf.mxu2 }
 0x7e3   :  { %v442_v28 = vadd.f32 %v586_v45, %v441_v27 }
 0x7e5   :  { %445 = vst.msk [vmem:[#allocation12] sm:$0x3] %vm444_vm0, %v442_v28 }
 0x7e6   :  { %470 = dma.vmem_to_hbm [thread:$0]  %s466_s19, 32, %s468_s25, [#allocation4]  }
 0x7e7   :  { %867 = dma.done.wait [#allocation4], 32  }
 0x7e8   :  { %868 = vsyncadd [#allocation4], 4294967264 }
 0x7e9   :  { %869 = dma.done.wait [#allocation14], 64  }
 0x7ea   :  { %870 = vsyncadd [#allocation14], 4294967232 }
 0x7eb   :  { %871 = dma.done.wait [#allocation17], 64  }
 0x7ec   :  { %872 = vsyncadd [#allocation17], 4294967232 }
 0x7ed   :  { %873 = dma.done.wait [#allocation20], 32  }
 0x7ee   :  { %874 = vsyncadd [#allocation20], 4294967264 }
 0x7ef   :  { %550 = vsyncpa [#allocation3], 1 }
 0x7f0   :  { %551 = vsyncpa [#allocation8], 1 }
 0x7f1   :  { %552 = vsyncpa [#allocation11], 1 }
 0x7f2   :  { %553 = vsyncpa [#allocation4], 1 }
 0x7f3   :  { %554 = vsyncpa [#allocation14], 1 }
 0x7f4   :  { %555 = vsyncpa [#allocation17], 1 }
 0x7f5   :  { %556 = vsyncpa [#allocation20], 1 }
 0x7f6   :  { %557 = vsyncpa [#allocation5], 1 }

</bundles_post_ra>
